<compile_context>
chip_gen: v6e
topology: v6e:2x2x1
jax: 0.10.0
libtpu: 0.0.40
codegen_flags: <defaults>
</compile_context>

<pallas_src>
import numpy as np

import jax
import jax.numpy as jnp
from jax.experimental import pallas as pl
from jax.experimental.pallas import tpu as pltpu


# ------------------------- noise schedule (numpy, identical to PyTorch ref) -------------------------
def vpsde_beta_t(t, T, min_beta, max_beta):
    t_coef = (2 * t - 1) / T ** 2
    return 1.0 - np.exp(-min_beta / T - 0.5 * (max_beta - min_beta) * t_coef)


def get_noise_schedule_list(schedule_mode, timesteps, min_beta=0.0, max_beta=0.01, s=0.008):
    if schedule_mode == 'linear':
        schedule_list = np.linspace(0.0001, max_beta, timesteps)
    elif schedule_mode == 'cosine':
        steps = timesteps + 1
        x = np.linspace(0, steps, steps)
        alphas_cumprod = np.cos((x / steps + s) / (1 + s) * np.pi * 0.5) ** 2
        alphas_cumprod = alphas_cumprod / alphas_cumprod[0]
        betas = 1 - alphas_cumprod[1:] / alphas_cumprod[:-1]
        schedule_list = np.clip(betas, a_min=0, a_max=0.999)
    elif schedule_mode == 'vpsde':
        schedule_list = np.array(
            [vpsde_beta_t(t, timesteps, min_beta, max_beta) for t in range(1, timesteps + 1)])
    else:
        raise NotImplementedError
    return schedule_list


# ------------------------------------ helpers ------------------------------------
_SMEM = pl.BlockSpec(memory_space=pltpu.MemorySpace.SMEM)


def _pick_lane_tile(n):
    """Largest 128-multiple tile that divides the lane extent, else whole extent."""
    for t in (2048, 1024, 512, 256, 128):
        if n % t == 0:
            return t
    return n


def _vmem_limit(block_bytes, scratch_bytes=0):
    """Explicit VMEM budget: double-buffered pipelined blocks + scratch + headroom.
    Clamped so it also fits v7x's 64 MiB physical VMEM."""
    est = 2 * block_bytes + scratch_bytes + (4 << 20)
    return int(min(max(est, 8 << 20), 48 << 20))


# ------------------------------------ Pallas kernels ------------------------------------
def train_fused_pallas(x0, xT, cond_bf16, a_vec, c_vec, tf_vec, wx_bf16, wc_bf16, bias, temb):
    """Fused training step on lane-dense (M, B*T) layout:
         x_t      = a*x_0 + c*x_T                       (q_sample, in-register, per-batch scales
                                                          encoded in the (1,N) a/c lane vectors)
         x_0_pred = wx @ x_t + wc @ cond + bias + temb*tfrac   (synthetic denoise_fn, bf16 MXU)
       Grid over lane tiles ("parallel") -> pipelined DMA + v7x 2-TC sharding."""
    M, N = x0.shape
    H = cond_bf16.shape[0]
    tn = _pick_lane_tile(N)
    grid = (N // tn,)

    def kernel(x0_ref, xT_ref, cond_ref, a_ref, c_ref, tf_ref,
               wx_ref, wc_ref, b_ref, te_ref, out_ref):
        # q_sample fused in-register: x_t never touches HBM.
        x_t = a_ref[...] * x0_ref[...] + c_ref[...] * xT_ref[...]          # (M, tn) f32
        y = jnp.dot(wx_ref[...], x_t.astype(jnp.bfloat16),
                    preferred_element_type=jnp.float32)                    # bf16 MXU, f32 acc
        y = y + jnp.dot(wc_ref[...], cond_ref[...],
                        preferred_element_type=jnp.float32)                # plain [M,H]x[H,tn]
        out_ref[...] = y + b_ref[...] + te_ref[...] * tf_ref[...]          # lane-dense store

    def lane_spec(rows):
        return pl.BlockSpec((rows, tn), lambda j: (0, j))

    def const_spec(shape):
        return pl.BlockSpec(shape, lambda j, _n=len(shape): (0,) * _n)

    block_bytes = (2 * M * tn * 4 + H * tn * 2 + 3 * tn * 4
                   + M * M * 2 + M * H * 2 + 2 * M * 4 + M * tn * 4)

    return pl.pallas_call(
        kernel,
        out_shape=jax.ShapeDtypeStruct((M, N), jnp.float32),
        grid=grid,
        in_specs=[lane_spec(M), lane_spec(M), lane_spec(H),
                  lane_spec(1), lane_spec(1), lane_spec(1),
                  const_spec((M, M)), const_spec((M, H)),
                  const_spec((M, 1)), const_spec((M, 1))],
        out_specs=lane_spec(M),
        compiler_params=pltpu.CompilerParams(
            dimension_semantics=("parallel",),
            vmem_limit_bytes=_vmem_limit(block_bytes)),
    )(x0, xT, cond_bf16, a_vec, c_vec, tf_vec, wx_bf16, wc_bf16, bias, temb)


def reverse_diffusion_pallas(x_init, cond_bf16, noise, coef1, coef2, std_tbl,
                             wx_bf16, wc_bf16, bias, temb, num_timesteps):
    """Whole reverse-diffusion loop in one pallas_call, lane-dense (M, B*T) layout.

       grid = (lane_tiles, infer_step) with ("parallel", "arbitrary") semantics; the
       state x lives in the VMEM-resident output block (constant index along S), so
       per step the only HBM traffic is the pipelined (1,M,tn) noise tile.

       Per step s (t = S-1-s, same for all batches as in the reference):
         x0_pred = wx @ x + [wc @ cond]        (cond term hoisted to s==0 scratch)
                   + bias + temb*(t/T)
         x       = coef1[t]*x0_pred + coef2[t]*x + std_masked[t]*noise[s]
       std_masked[0] == 0 encodes the (t != 0) mask host-side (no in-kernel exp/where)."""
    S, M, N = noise.shape
    H = cond_bf16.shape[0]
    tn = _pick_lane_tile(N)
    nt = N // tn
    inv_T = 1.0 / float(num_timesteps)

    def kernel(c1_ref, c2_ref, std_ref, xi_ref, cond_ref, n_ref,
               wx_ref, wc_ref, b_ref, te_ref, out_ref, cmm_ref):
        s = pl.program_id(1)

        @pl.when(s == 0)
        def _():
            out_ref[...] = xi_ref[...]           # initialize VMEM-resident state for this tile
            # Step-invariant cond contraction hoisted out of the S loop (bf16 MXU, f32 acc).
            cmm_ref[...] = jnp.dot(wc_ref[...], cond_ref[...],
                                   preferred_element_type=jnp.float32)

        tt = (S - 1) - s                          # current diffusion timestep
        c1 = c1_ref[tt]
        c2 = c2_ref[tt]
        std = std_ref[tt]
        tfrac = tt.astype(jnp.float32) * inv_T

        x = out_ref[...]                          # previous state (VMEM-resident)
        y = jnp.dot(wx_ref[...], x.astype(jnp.bfloat16),
                    preferred_element_type=jnp.float32)
        x0_pred = y + cmm_ref[...] + b_ref[...] + te_ref[...] * tfrac
        out_ref[...] = c1 * x0_pred + c2 * x + std * n_ref[0]

    def lane_spec(rows):
        return pl.BlockSpec((rows, tn), lambda i, s: (0, i))

    def const_spec(shape):
        return pl.BlockSpec(shape, lambda i, s, _n=len(shape): (0,) * _n)

    noise_spec = pl.BlockSpec((1, M, tn), lambda i, s: (s, 0, i))

    block_bytes = (2 * M * tn * 4 + H * tn * 2 + M * tn * 4
                   + M * M * 2 + M * H * 2 + 2 * M * 4)
    scratch_bytes = M * tn * 4

    return pl.pallas_call(
        kernel,
        out_shape=jax.ShapeDtypeStruct((M, N), jnp.float32),
        grid=(nt, S),
        in_specs=[_SMEM, _SMEM, _SMEM,
                  lane_spec(M), lane_spec(H), noise_spec,
                  const_spec((M, M)), const_spec((M, H)),
                  const_spec((M, 1)), const_spec((M, 1))],
        out_specs=lane_spec(M),
        scratch_shapes=[pltpu.VMEM((M, tn), jnp.float32)],
        compiler_params=pltpu.CompilerParams(
            dimension_semantics=("parallel", "arbitrary"),
            vmem_limit_bytes=_vmem_limit(block_bytes, scratch_bytes)),
    )(coef1, coef2, std_tbl, x_init, cond_bf16, noise, wx_bf16, wc_bf16, bias, temb)


# ------------------------------------ GaussianDiffusion ------------------------------------
class GaussianDiffusionPallas:
    def __init__(self, out_dims, cond_dim, timesteps=100, time_scale=1,
                 schedule_type='vpsde', max_beta=0.02, spec_min=None, spec_max=None, seed=0):
        betas = get_noise_schedule_list(schedule_mode=schedule_type, timesteps=timesteps + 1,
                                        min_beta=0.1, max_beta=max_beta, s=0.008)
        alphas = 1.0 - betas
        alphas_cumprod = np.cumprod(alphas, axis=0)
        alphas_cumprod_prev = np.append(1.0, alphas_cumprod[:-1])

        self.time_scale = time_scale          # stored for parity; unused in forward (as in reference)
        self.num_timesteps = int(timesteps)
        self.mel_bins = out_dims

        f32 = lambda a: jnp.asarray(a, dtype=jnp.float32)
        self.betas = f32(betas)
        self.alphas_cumprod = f32(alphas_cumprod)
        self.alphas_cumprod_prev = f32(alphas_cumprod_prev)
        self.sqrt_alphas_cumprod = f32(np.sqrt(alphas_cumprod))
        self.sqrt_one_minus_alphas_cumprod = f32(np.sqrt(1.0 - alphas_cumprod))
        self.sqrt_recip_alphas_cumprod = f32(np.sqrt(1.0 / alphas_cumprod))
        self.sqrt_recipm1_alphas_cumprod = f32(np.sqrt(1.0 / alphas_cumprod - 1))
        posterior_variance = betas * (1.0 - alphas_cumprod_prev) / (1.0 - alphas_cumprod)
        posterior_log_variance_clipped = np.log(np.maximum(posterior_variance, 1e-20))
        self.posterior_variance = f32(posterior_variance)
        self.posterior_log_variance_clipped = f32(posterior_log_variance_clipped)
        self.posterior_mean_coef1 = f32(betas * np.sqrt(alphas_cumprod_prev) / (1.0 - alphas_cumprod))
        self.posterior_mean_coef2 = f32((1.0 - alphas_cumprod_prev) * np.sqrt(alphas) / (1.0 - alphas_cumprod))

        # Masked posterior std table: std_masked[t] = (t != 0) * exp(0.5 * logvar[t]).
        # (Matches the reference's nonzero_mask * exp(0.5*model_log_variance); the reverse loop
        #  indexes coefficients at t = infer_step-1 .. 0 exactly as the reference p_sample loop,
        #  and the reference applies no clamp to x_0_pred.)
        std_masked = np.exp(0.5 * posterior_log_variance_clipped)
        std_masked[0] = 0.0
        self.std_masked = f32(std_masked)

        spec_min = np.zeros((out_dims,), np.float32) if spec_min is None else np.asarray(spec_min, np.float32)
        spec_max = np.ones((out_dims,), np.float32) if spec_max is None else np.asarray(spec_max, np.float32)
        # (unused in forward: norm_spec / denorm_spec are identity in the reference module)
        self.spec_min = f32(np.transpose(spec_min[None, None, :out_dims], (1, 0, 2)))
        self.spec_max = f32(np.transpose(spec_max[None, None, :out_dims], (1, 0, 2)))

        # Deterministic synthetic denoise_fn parameters (the reference takes denoise_fn as a module).
        k1, k2, k3, k4 = jax.random.split(jax.random.PRNGKey(seed + 1234), 4)
        self.wx = 0.1 * jax.random.normal(k1, (out_dims, out_dims), jnp.float32)
        self.wc = 0.1 * jax.random.normal(k2, (out_dims, cond_dim), jnp.float32)
        self.bias = 0.1 * jax.random.normal(k3, (out_dims, 1), jnp.float32)
        self.temb = 0.1 * jax.random.normal(k4, (out_dims, 1), jnp.float32)
        # bf16 copies fed to the MXU (accumulation stays f32 via preferred_element_type).
        self.wx_bf16 = self.wx.astype(jnp.bfloat16)
        self.wc_bf16 = self.wc.astype(jnp.bfloat16)

    # -------- module sub-ops --------
    def norm_spec(self, x):
        return x

    def denorm_spec(self, x):
        return x

    # -------- forward --------
    def forward(self, cond, src_spec=None, gt_spec=None, infer_step=4, infer=False, key=None):
        # cond: [B, T, H]; gt_spec / src_spec: [B, 1, M, T]
        b = cond.shape[0]
        n_frames = cond.shape[1]
        H = cond.shape[2]
        M = self.mel_bins
        N = b * n_frames

        # One cheap host-side pass: orient cond to (H, B*T) so the MXU sees a plain
        # [M,H] x [H,N] contraction (no per-step in-kernel transpose), stored bf16.
        cond_flat = jnp.transpose(cond, (2, 0, 1)).reshape(H, N).astype(jnp.bfloat16)

        if not infer:
            x_0 = self.norm_spec(gt_spec)
            kt, kn = jax.random.split(key)
            t = jax.random.randint(kt, (b,), 0, self.num_timesteps + 1, dtype=jnp.int32)
            x_T = src_spec if src_spec is not None else jax.random.normal(kn, x_0.shape, jnp.float32)

            # Lane-dense (M, B*T) layout for the fused kernel (layout plumbing, one cheap pass).
            x0_flat = jnp.transpose(x_0[:, 0], (1, 0, 2)).reshape(M, N)
            xT_flat = jnp.transpose(x_T[:, 0], (1, 0, 2)).reshape(M, N)
            # Per-batch q_sample scales / time fraction encoded as (1, B*T) lane vectors.
            a_vec = jnp.repeat(self.sqrt_alphas_cumprod[t], n_frames)[None, :]
            c_vec = jnp.repeat(self.sqrt_one_minus_alphas_cumprod[t], n_frames)[None, :]
            tf_vec = jnp.repeat(t.astype(jnp.float32) / float(self.num_timesteps), n_frames)[None, :]

            out_flat = train_fused_pallas(x0_flat, xT_flat, cond_flat, a_vec, c_vec, tf_vec,
                                          self.wx_bf16, self.wc_bf16, self.bias, self.temb)
            x_0_pred = jnp.transpose(out_flat.reshape(M, b, n_frames), (1, 0, 2))[:, None]
            return x_0_pred, x_0
        else:
            infer_step = int(np.clip(infer_step, 1, self.num_timesteps))
            key, ku, kn = jax.random.split(key, 3)
            # Drawn directly in the lane-dense layout (iid uniform / normal, same distribution
            # as the reference's torch.rand / randn).
            x_init = jax.random.uniform(ku, (M, N), jnp.float32)
            noise = jax.random.normal(kn, (infer_step, M, N), jnp.float32)

            out_flat = reverse_diffusion_pallas(x_init, cond_flat, noise,
                                                self.posterior_mean_coef1,
                                                self.posterior_mean_coef2,
                                                self.std_masked,
                                                self.wx_bf16, self.wc_bf16,
                                                self.bias, self.temb,
                                                self.num_timesteps)
            x = jnp.transpose(out_flat.reshape(M, b, n_frames), (1, 2, 0))   # [B, T, M]
            return self.denorm_spec(x)


# ------------------------------------ demo ------------------------------------
if __name__ == "__main__":
    B, T, H, M = 2, 32, 32, 16          # batch, frames, cond hidden, mel bins
    TIMESTEPS = 100

    model = GaussianDiffusionPallas(out_dims=M, cond_dim=H, timesteps=TIMESTEPS,
                                    schedule_type='vpsde', max_beta=0.02,
                                    spec_min=np.linspace(-1.0, -0.5, M),
                                    spec_max=np.linspace(0.5, 1.0, M), seed=0)

    key = jax.random.PRNGKey(0)
    k_cond, k_gt, k_src, k_fwd, k_inf = jax.random.split(key, 5)
    cond = jax.random.normal(k_cond, (B, T, H), jnp.float32)
    gt_spec = jax.random.normal(k_gt, (B, 1, M, T), jnp.float32)
    src_spec = jax.random.normal(k_src, (B, 1, M, T), jnp.float32)

    # training path (fused q_sample + denoise, single pallas_call)
    x_0_pred, x_0 = model.forward(cond, src_spec=src_spec, gt_spec=gt_spec,
                                  infer=False, key=k_fwd)
    jax.block_until_ready(x_0_pred)
    jax.block_until_ready(x_0)
    assert x_0_pred.shape == (B, 1, M, T) and x_0.shape == (B, 1, M, T)
    assert bool(jnp.all(jnp.isfinite(x_0_pred)))

    # inference path (4-step reverse diffusion, single pallas_call)
    mel = model.forward(cond, infer_step=4, infer=True, key=k_inf)
    jax.block_until_ready(mel)
    assert mel.shape == (B, T, M)
    assert bool(jnp.all(jnp.isfinite(mel)))

    print("KERNEL_OK")
</pallas_src>

<mosaic_0001>
module attributes {stable_mosaic.version = 11 : i64} {
  func.func @kernel(%arg0: i32, %arg1: memref<16x64xf32, #tpu.memory_space<vmem>>, %arg2: memref<16x64xf32, #tpu.memory_space<vmem>>, %arg3: memref<32x64xbf16, #tpu.memory_space<vmem>>, %arg4: memref<1x64xf32, #tpu.memory_space<vmem>>, %arg5: memref<1x64xf32, #tpu.memory_space<vmem>>, %arg6: memref<1x64xf32, #tpu.memory_space<vmem>>, %arg7: memref<16x16xbf16, #tpu.memory_space<vmem>>, %arg8: memref<16x32xbf16, #tpu.memory_space<vmem>>, %arg9: memref<16x1xf32, #tpu.memory_space<vmem>>, %arg10: memref<16x1xf32, #tpu.memory_space<vmem>>, %arg11: memref<16x64xf32, #tpu.memory_space<vmem>>) attributes {dimension_semantics = [#tpu.dimension_semantics<parallel>], iteration_bounds = array<i64: 1>, scalar_prefetch = 0 : i64, scratch_operands = 0 : i64, tpu.core_type = #tpu.core_type<tc>, window_params = [{transform_indices = @transform_0, window_bounds = array<i64: 16, 64>}, {transform_indices = @transform_1, window_bounds = array<i64: 16, 64>}, {transform_indices = @transform_2, window_bounds = array<i64: 32, 64>}, {transform_indices = @transform_3, window_bounds = array<i64: 1, 64>}, {transform_indices = @transform_4, window_bounds = array<i64: 1, 64>}, {transform_indices = @transform_5, window_bounds = array<i64: 1, 64>}, {pipeline_mode = #tpu.pipeline_mode<synchronous>, transform_indices = @transform_6, window_bounds = array<i64: 16, 16>}, {pipeline_mode = #tpu.pipeline_mode<synchronous>, transform_indices = @transform_7, window_bounds = array<i64: 16, 32>}, {pipeline_mode = #tpu.pipeline_mode<synchronous>, transform_indices = @transform_8, window_bounds = array<i64: 16, 1>}, {pipeline_mode = #tpu.pipeline_mode<synchronous>, transform_indices = @transform_9, window_bounds = array<i64: 16, 1>}, {transform_indices = @transform_10, window_bounds = array<i64: 16, 64>}]} {
    %c0 = arith.constant 0 : index
    %c0_0 = arith.constant 0 : index
    %0 = vector.load %arg4[%c0, %c0_0] : memref<1x64xf32, #tpu.memory_space<vmem>>, vector<1x64xf32>
    %c0_1 = arith.constant 0 : index
    %c0_2 = arith.constant 0 : index
    %1 = vector.load %arg1[%c0_1, %c0_2] : memref<16x64xf32, #tpu.memory_space<vmem>>, vector<16x64xf32>
    %2 = vector.broadcast %0 : vector<1x64xf32> to vector<16x64xf32>
    %3 = arith.mulf %2, %1 : vector<16x64xf32>
    %c0_3 = arith.constant 0 : index
    %c0_4 = arith.constant 0 : index
    %4 = vector.load %arg5[%c0_3, %c0_4] : memref<1x64xf32, #tpu.memory_space<vmem>>, vector<1x64xf32>
    %c0_5 = arith.constant 0 : index
    %c0_6 = arith.constant 0 : index
    %5 = vector.load %arg2[%c0_5, %c0_6] : memref<16x64xf32, #tpu.memory_space<vmem>>, vector<16x64xf32>
    %6 = vector.broadcast %4 : vector<1x64xf32> to vector<16x64xf32>
    %7 = arith.mulf %6, %5 : vector<16x64xf32>
    %8 = arith.addf %3, %7 : vector<16x64xf32>
    %c0_7 = arith.constant 0 : index
    %c0_8 = arith.constant 0 : index
    %9 = vector.load %arg7[%c0_7, %c0_8] : memref<16x16xbf16, #tpu.memory_space<vmem>>, vector<16x16xbf16>
    %10 = arith.truncf %8 : vector<16x64xf32> to vector<16x64xbf16>
    %cst = arith.constant dense<0.000000e+00> : vector<16x64xf32>
    %11 = tpu.matmul %9, %10, %cst {dimension_numbers = #tpu.dot_dimension_numbers<[1], [0], [0], [1], [0, 0, 1, 1], [], []>} : vector<16x16xbf16>, vector<16x64xbf16>, vector<16x64xf32> -> vector<16x64xf32>
    %c0_9 = arith.constant 0 : index
    %c0_10 = arith.constant 0 : index
    %12 = vector.load %arg8[%c0_9, %c0_10] : memref<16x32xbf16, #tpu.memory_space<vmem>>, vector<16x32xbf16>
    %c0_11 = arith.constant 0 : index
    %c0_12 = arith.constant 0 : index
    %13 = vector.load %arg3[%c0_11, %c0_12] : memref<32x64xbf16, #tpu.memory_space<vmem>>, vector<32x64xbf16>
    %cst_13 = arith.constant dense<0.000000e+00> : vector<16x64xf32>
    %14 = tpu.matmul %12, %13, %cst_13 {dimension_numbers = #tpu.dot_dimension_numbers<[1], [0], [0], [1], [0, 0, 1, 1], [], []>} : vector<16x32xbf16>, vector<32x64xbf16>, vector<16x64xf32> -> vector<16x64xf32>
    %15 = arith.addf %11, %14 : vector<16x64xf32>
    %c0_14 = arith.constant 0 : index
    %c0_15 = arith.constant 0 : index
    %16 = vector.load %arg9[%c0_14, %c0_15] : memref<16x1xf32, #tpu.memory_space<vmem>>, vector<16x1xf32>
    %17 = vector.broadcast %16 : vector<16x1xf32> to vector<16x64xf32>
    %18 = arith.addf %15, %17 : vector<16x64xf32>
    %c0_16 = arith.constant 0 : index
    %c0_17 = arith.constant 0 : index
    %19 = vector.load %arg10[%c0_16, %c0_17] : memref<16x1xf32, #tpu.memory_space<vmem>>, vector<16x1xf32>
    %c0_18 = arith.constant 0 : index
    %c0_19 = arith.constant 0 : index
    %20 = vector.load %arg6[%c0_18, %c0_19] : memref<1x64xf32, #tpu.memory_space<vmem>>, vector<1x64xf32>
    %21 = vector.broadcast %19 : vector<16x1xf32> to vector<16x64xf32>
    %22 = vector.broadcast %20 : vector<1x64xf32> to vector<16x64xf32>
    %23 = arith.mulf %21, %22 : vector<16x64xf32>
    %24 = arith.addf %18, %23 : vector<16x64xf32>
    %c0_20 = arith.constant 0 : index
    %c0_21 = arith.constant 0 : index
    %25 = vector.load %arg11[%c0_20, %c0_21] : memref<16x64xf32, #tpu.memory_space<vmem>>, vector<16x64xf32>
    tpu.vector_store %arg11[%c0_20, %c0_21], %24 {strides = array<i32>} : memref<16x64xf32, #tpu.memory_space<vmem>>, vector<16x64xf32>,
    return
  }
  func.func @transform_0(%arg0: i32) -> (i32, i32) {
    %c0_i32 = arith.constant 0 : i32
    %c0_i32_0 = arith.constant 0 : i32
    return %c0_i32, %arg0 : i32, i32
  }
  func.func @transform_1(%arg0: i32) -> (i32, i32) {
    %c0_i32 = arith.constant 0 : i32
    %c0_i32_0 = arith.constant 0 : i32
    return %c0_i32, %arg0 : i32, i32
  }
  func.func @transform_2(%arg0: i32) -> (i32, i32) {
    %c0_i32 = arith.constant 0 : i32
    %c0_i32_0 = arith.constant 0 : i32
    return %c0_i32, %arg0 : i32, i32
  }
  func.func @transform_3(%arg0: i32) -> (i32, i32) {
    %c0_i32 = arith.constant 0 : i32
    %c0_i32_0 = arith.constant 0 : i32
    return %c0_i32, %arg0 : i32, i32
  }
  func.func @transform_4(%arg0: i32) -> (i32, i32) {
    %c0_i32 = arith.constant 0 : i32
    %c0_i32_0 = arith.constant 0 : i32
    return %c0_i32, %arg0 : i32, i32
  }
  func.func @transform_5(%arg0: i32) -> (i32, i32) {
    %c0_i32 = arith.constant 0 : i32
    %c0_i32_0 = arith.constant 0 : i32
    return %c0_i32, %arg0 : i32, i32
  }
  func.func @transform_6(%arg0: i32) -> (i32, i32) {
    %c0_i32 = arith.constant 0 : i32
    %c0_i32_0 = arith.constant 0 : i32
    %c0_i32_1 = arith.constant 0 : i32
    return %c0_i32, %c0_i32_0 : i32, i32
  }
  func.func @transform_7(%arg0: i32) -> (i32, i32) {
    %c0_i32 = arith.constant 0 : i32
    %c0_i32_0 = arith.constant 0 : i32
    %c0_i32_1 = arith.constant 0 : i32
    return %c0_i32, %c0_i32_0 : i32, i32
  }
  func.func @transform_8(%arg0: i32) -> (i32, i32) {
    %c0_i32 = arith.constant 0 : i32
    %c0_i32_0 = arith.constant 0 : i32
    %c0_i32_1 = arith.constant 0 : i32
    return %c0_i32, %c0_i32_0 : i32, i32
  }
  func.func @transform_9(%arg0: i32) -> (i32, i32) {
    %c0_i32 = arith.constant 0 : i32
    %c0_i32_0 = arith.constant 0 : i32
    %c0_i32_1 = arith.constant 0 : i32
    return %c0_i32, %c0_i32_0 : i32, i32
  }
  func.func @transform_10(%arg0: i32) -> (i32, i32) {
    %c0_i32 = arith.constant 0 : i32
    %c0_i32_0 = arith.constant 0 : i32
    return %c0_i32, %arg0 : i32, i32
  }
}

</mosaic_0001>

<bundles_post_ra>
// kernel: tpu_custom_call.1
= control target key start
LH: loop header
LB: loop body
LE: loop exit
PB: predicated region body
PF: predicated region fallthrough
CT: control target
= control target key end

     0   :  { %15 = vsyncpa [#allocation3], 0  ;;  %s558_s0 = inlined_call_operand.vmem [shape: f32[16,64], index: 0, kind: input, shape index: {}]   ;;  %s559_s1 = inlined_call_operand.vmem [shape: f32[16,64], index: 1, kind: input, shape index: {}]   ;;  %s560_s2 = inlined_call_operand.hbm [shape: bf16[32,64], index: 2, kind: input, shape index: {}]   ;;  %s561_s3 = inlined_call_operand.hbm [shape: f32[1,64], index: 3, kind: input, shape index: {}]   ;;  %s562_s4 = inlined_call_operand.hbm [shape: f32[1,64], index: 4, kind: input, shape index: {}]   ;;  %s563_s5 = inlined_call_operand.vmem [shape: f32[1,64], index: 5, kind: input, shape index: {}]   ;;  %s564_s6 = inlined_call_operand.vmem [shape: bf16[16,16], index: 6, kind: input, shape index: {}]   ;;  %s565_s7 = inlined_call_operand.hbm [shape: bf16[16,32], index: 7, kind: input, shape index: {}]   ;;  %s566_s8 = inlined_call_operand.vmem [shape: f32[16,1], index: 8, kind: input, shape index: {}]   ;;  %s567_s9 = inlined_call_operand.vmem [shape: f32[16,1], index: 9, kind: input, shape index: {}]   ;;  %s568_s10 = inlined_call_operand.hbm [shape: f32[16,64], index: 10, kind: output, shape index: {}]  }
   0x1   :  { %16 = vsyncpa [#allocation6], 0 }
   0x2   :  { %17 = vsyncpa [#allocation9], 0 }
   0x3   :  { %18 = vsyncpa [#allocation4], 0  ;;  %s446_s13 = smov [#allocation5]   ;;  %s447_s15 = smov [#allocation2]  }
   0x4   :  { %s41_s14 = sshll.u32 %s446_s13, 4  ;;  %s28_s16 = sshll.u32 %s447_s15, 4  ;;  %s42_s14 = int_to_ptr.vmem [resolvable:$true] %s41_s14  ;;  %s29_s16 = int_to_ptr.vmem [resolvable:$true] %s28_s16 }
   0x5   :  { %s346_s17 = scalar_lea.vmem %s42_s14, 16  ;;  %s350_s18 = scalar_lea.vmem %s42_s14, 32 }
   0x6   :  { %p347_p0 = scmp.ne.s32.totalorder %s42_s14, %s346_s17  ;;  %p351_p1 = scmp.lt.s32.totalorder %s42_s14, %s42_s14 }
   0x7   :  { %p352_p2 = scmp.lt.s32.totalorder %s350_s18, %s346_s17 }
   0x9   :  { %p353_p3 = por %p352_p2, %p351_p1 }
   0xb   :  { %p354_p4 = pnand %p353_p3, %p347_p0 }
   0xd   :  { %357 = shalt.err (!%p354_p4)
}
   0xe   :  { %44 = dma.hbm_to_vmem [thread:$0]  %s561_s3, 16, %s42_s14, [#allocation6]  }
   0xf   :  { %s366_s21 = scalar_lea.vmem %s29_s16, 256  ;;  %p371_p6 = scmp.lt.s32.totalorder %s29_s16, %s29_s16 }
  0x10   :  { %p367_p5 = scmp.ne.s32.totalorder %s29_s16, %s366_s21  ;;  %p372_p7 = scmp.lt.s32.totalorder %s366_s21, %s366_s21 }
  0x12   :  { %p373_p8 = por %p372_p7, %p371_p6 }
  0x14   :  { %p374_p9 = pnand %p373_p8, %p367_p5 }
  0x16   :  { %377 = shalt.err (!%p374_p9)
}
  0x17   :  { %s448_s22 = smov 64   ;;  %s449_s23 = smov 4  }
  0x18   :  { %34 = dma.hbm_to_vmem [thread:$0]  %s560_s2, 256, %s29_s16, [#allocation3], %s448_s22, %s448_s22, %s449_s23  }
  0x19   :  { %s450_s26 = smov [#allocation7]   ;;  %s451_s28 = smov [#allocation8]  }
  0x1a   :  { %s51_s27 = sshll.u32 %s450_s26, 4  ;;  %s64_s29 = sshll.u32 %s451_s28, 4  ;;  %s52_s27 = int_to_ptr.vmem [resolvable:$true] %s51_s27  ;;  %s65_s29 = int_to_ptr.vmem [resolvable:$true] %s64_s29 }
  0x1b   :  { %s386_s3 = scalar_lea.vmem %s52_s27, 16  ;;  %s390_s30 = scalar_lea.vmem %s52_s27, 32 }
  0x1c   :  { %p387_p10 = scmp.ne.s32.totalorder %s52_s27, %s386_s3  ;;  %p391_p11 = scmp.lt.s32.totalorder %s52_s27, %s52_s27 }
  0x1d   :  { %p392_p12 = scmp.lt.s32.totalorder %s390_s30, %s386_s3 }
  0x1f   :  { %p393_p13 = por %p392_p12, %p391_p11 }
  0x21   :  { %p394_p0 = pnand %p393_p13, %p387_p10 }
  0x23   :  { %397 = shalt.err (!%p394_p0)
}
  0x24   :  { %54 = dma.hbm_to_vmem [thread:$0]  %s562_s4, 16, %s52_s27, [#allocation6]  }
  0x25   :  { %s406_s13 = scalar_lea.vmem %s65_s29, 128  ;;  %p411_p2 = scmp.lt.s32.totalorder %s65_s29, %s65_s29 }
  0x26   :  { %p407_p1 = scmp.ne.s32.totalorder %s65_s29, %s406_s13  ;;  %p412_p3 = scmp.lt.s32.totalorder %s406_s13, %s406_s13 }
  0x28   :  { %p413_p4 = por %p412_p3, %p411_p2 }
  0x2a   :  { %p414_p5 = pnand %p413_p4, %p407_p1 }
  0x2c   :  { %417 = shalt.err (!%p414_p5)
}
  0x2d   :  { %70 = dma.hbm_to_vmem [thread:$0]  %s565_s7, 128, %s65_s29, [#allocation9], %s448_s22, %s448_s22, %s449_s23  }
  0x2e   :  { %438 = dma.done.wait [#allocation3], 256  }
  0x2f   :  { %439 = vsyncadd [#allocation3], 4294967040 }
  0x30   :  { %440 = dma.done.wait [#allocation6], 32  }
  0x31   :  { %441 = vsyncadd [#allocation6], 4294967264 }
  0x32   :  { %442 = dma.done.wait [#allocation9], 128  }
  0x33   :  { %443 = vsyncadd [#allocation9], 4294967168  ;;  %v452_v0 = vmov 0.0   ;;  %vm453_vm0 = vmmov 0   ;;  %v454_v1 = vmov 0   ;;  %v334_v2 = vld [vmem:[#allocation2 + $0x8] sm:$0xff]  }
  0x34   :  { %306 = vmatprep.subr.bf16.mxu0 %v452_v0  ;;  %314 = vmatprep.subr.bf16.mxu1 %v452_v0  ;;  %v335_v3 = vld [vmem:[#allocation2] sm:$0xff]   ;;  %v292_v4 = vld [vmem:[#allocation5] ss:$0 sm:$0xff]  ;;  %v90_v6 = vld [vmem:[%s558_s0 + $0x8] sm:$0xff]  ;;  %vm138_vm1 = vcmask 261120   ;;  %vm188_vm2 = vcmask 130048  }
  0x35   :  { %310 = vmatprep.mubr.msk.bf16.mxu0 %vm453_vm0, %v452_v0  ;;  %316 = vmatprep.mubr.msk.bf16.mxu1 %vm453_vm0, %v452_v0  ;;  %v89_v5 = vld [vmem:[%s558_s0] sm:$0xff]  ;;  %v98_v8 = vmul.f32 %v292_v4, %v90_v6  ;;  %v293_v9 = vld [vmem:[#allocation7] ss:$0 sm:$0xff]  ;;  %v101_v11 = vld [vmem:[%s559_s1 + $0x8] sm:$0xff]  ;;  %vm270_vm3 = vcmask 523264  }
  0x36   :  { %333 = vset.pattern.permute.xlu1 %v454_v1  ;;  %332 = vset.pattern.permute.xlu0 %v454_v1  ;;  %v97_v7 = vmul.f32 %v292_v4, %v89_v5  ;;  %v100_v10 = vld [vmem:[%s559_s1] sm:$0xff]  ;;  %v109_v13 = vmul.f32 %v293_v9, %v101_v11  ;;  %v336_v14 = vld [vmem:[#allocation8] sm:$0xff]   ;;  %v248_v20 = vld [vmem:[%s567_s9 + $0x8] sm:$0xff] }
  0x37   :  { %307 = vmatpush3.bf16.msra.mxu0 %v334_v2  ;;  %v108_v12 = vmul.f32 %v293_v9, %v100_v10  ;;  %v247_v17 = vld [vmem:[%s567_s9] sm:$0xff]  ;;  %v234_v21 = vld [vmem:[%s566_s8 + $0x8] sm:$0xff] }
  0x38   :  { %308 = vmatprep.subr.bf16.mxu0 %v452_v0  ;;  %v111_v16 = vadd.f32 %v109_v13, %v98_v8  ;;  %v233_v18 = vld [vmem:[%s566_s8] sm:$0xff]  ;;  %252 = vperm.xlu1 %333, %v247_v17  }
  0x39   :  { %v110_v15 = vadd.f32 %v108_v12, %v97_v7  ;;  %237 = vperm.xlu0 %332, %v233_v18   ;;  %v337_v22 = vld [vmem:[%s564_s6] sm:$0xff]   ;;  %s455_s6 = smov [#allocation10]  }
  0x3a   :  { %v300_v24 = vld [vmem:[%s563_s5] ss:$0 sm:$0xff]  ;;  %s278_s8 = sshll.u32 %s455_s6, 4  ;;  %s279_s8 = int_to_ptr.vmem [resolvable:$true] %s278_s8 }
  0x3b   :  { %309 = vmatpush3.bf16.msra.mxu0 %v335_v3  ;;  %v114_v19 = vpack.c.bf16 %v111_v16, %v110_v15  ;;  %s418_s5 = scalar_lea.vmem %s279_s8, 256  ;;  %p423_p7 = scmp.lt.s32.totalorder %s279_s8, %s279_s8 }
  0x3c   :  { %257 = vperm.xlu1 %333, %v248_v20   ;;  %p419_p6 = scmp.ne.s32.totalorder %s279_s8, %s418_s5  ;;  %p424_p8 = scmp.lt.s32.totalorder %s418_s5, %s418_s5 }
  0x3d   :  { %315 = vmatpush3.bf16.msra.mxu1 %v114_v19  ;;  %242 = vperm.xlu0 %332, %v234_v21  }
  0x3e   :  { %311 = vmatmul.mubr.msk.bf16.vlgmr.msra.gmra.mxu0 %vm138_vm1, %v336_v14  ;;  %p425_p9 = por %p424_p8, %p423_p7 }
  0x40   :  { %317 = vmatmul.mubr.msk.bf16.vlgmr.msra.gmra.mxu1 %vm188_vm2, %v337_v22  ;;  %p426_p10 = pnand %p425_p9, %p419_p6 }
  0xb3   :  { %v253_v25 = vpop.permute.xlu1 %252 }
  0xb4   :  { %v238_v27 = vpop.permute.xlu0 %237  ;;  %v266_v30 = vmul.f32 %v300_v24, %v253_v25 }
  0xb7   :  { %v258_v35 = vpop.permute.xlu1 %257 }
  0xb8   :  { %v243_v39 = vpop.permute.xlu0 %242  ;;  %v267_v41 = vmul.f32 %v300_v24, %v258_v35 }
  0xfe   :  { %v176_v23 = vpop.f32.mrf.mxu0 }
 0x100   :  { %v312_v26 = vpop.f32.mrf.mxu0  ;;  %v226_v28 = vpop.f32.mrf.mxu1 }
 0x101   :  { %v227_v31 = vadd.f32 %v226_v28, %v176_v23 }
 0x102   :  { %v179_v29 = vpop.f32.mrf.mxu0  ;;  %v318_v32 = vpop.f32.mrf.mxu1 }
 0x103   :  { %v245_v34 = vadd.f32 %v238_v27, %v227_v31 }
 0x104   :  { %v313_v33 = vpop.f32.mrf.mxu0  ;;  %v229_v36 = vpop.f32.mrf.mxu1 }
 0x105   :  { %v268_v37 = vadd.f32 %v266_v30, %v245_v34  ;;  %v230_v38 = vadd.f32 %v229_v36, %v179_v29 }
 0x106   :  { %v319_v40 = vpop.f32.mrf.mxu1 }
 0x107   :  { %v246_v42 = vadd.f32 %v243_v39, %v230_v38  ;;  %271 = vst.msk [vmem:[#allocation10] sm:$0xff] %vm270_vm3, %v268_v37 }
 0x109   :  { %v269_v43 = vadd.f32 %v267_v41, %v246_v42 }
 0x10b   :  { %272 = vst.msk [vmem:[#allocation10 + $0x8] sm:$0xff] %vm270_vm3, %v269_v43 }
 0x10c   :  { %429 = shalt.err (!%p426_p10)
}
 0x10d   :  { %s456_s9 = smov 128   ;;  %s457_s30 = smov 8  }
 0x10e   :  { %284 = dma.vmem_to_hbm [thread:$0]  %s279_s8, 256, %s568_s10, [#allocation4], %s456_s9, %s456_s9, %s457_s30  }
 0x10f   :  { %444 = dma.done.wait [#allocation4], 256  }
 0x110   :  { %445 = vsyncadd [#allocation4], 4294967040 }
 0x111   :  { %288 = vsyncpa [#allocation3], 1 }
 0x112   :  { %289 = vsyncpa [#allocation6], 1 }
 0x113   :  { %290 = vsyncpa [#allocation9], 1 }
 0x114   :  { %291 = vsyncpa [#allocation4], 1 }

</bundles_post_ra>
